<compile_context>
chip_gen: v5e
topology: v5e:2x2
jax: 0.10.0
libtpu: 0.0.40
codegen_flags: <defaults>
</compile_context>

<pallas_src>
import jax
import jax.numpy as jnp
from jax.experimental import pallas as pl
from jax.experimental.pallas import tpu as pltpu


_LANE = 128      # vreg lane width
_SUBLANE = 8     # vreg sublane count (f32)


def _round_up(x, m):
    return ((x + m - 1) // m) * m


# ----------------------------- Pallas kernel -------------------------------

def _unsup_model_kernel(x_ref, w1_ref, w2_ref, pred_ref, sse_ref):
    """One node-tile of the auto-encoder model (lane-dense padded layout).

    x_ref    : (TILE_N, Fp)  node-feature tile (zero-padded)      (input)
    w1_ref   : (Fp, Hp)      encoder weight    (zero-padded)      (input, resident)
    w2_ref   : (Hp, Fp)      decoder weight    (zero-padded)      (input, resident)
    pred_ref : (TILE_N, Hp)  node-embedding tile ("pred")         (output)
    sse_ref  : (8, 128)      per-tile partial squared-error sums  (output)
    """
    x = x_ref[...].astype(jnp.float32)                # .float() in predict()

    # Encoder: h = relu(x @ W1)  -> this is "pred"
    h = jnp.maximum(
        jnp.dot(x, w1_ref[...], preferred_element_type=jnp.float32), 0.0)
    # Decoder: x_rec = h @ W2
    x_rec = jnp.dot(h, w2_ref[...], preferred_element_type=jnp.float32)

    pred_ref[...] = h

    diff = x_rec - x
    dsq = diff * diff                                  # (TILE_N, Fp)

    tile_n, fp = dsq.shape
    # Fold sublane-tiles with aligned VPU adds (no per-step cross-lane reduce,
    # no scalar (1,1) round-trip, better f32 accumulation).
    acc = dsq[0:_SUBLANE, :]
    for j in range(1, tile_n // _SUBLANE):
        acc = acc + dsq[j * _SUBLANE:(j + 1) * _SUBLANE, :]
    # Fold lane groups down to a single 128-lane vreg (aligned lane slices).
    part = acc[:, 0:_LANE]
    for k in range(1, fp // _LANE):
        part = part + acc[:, k * _LANE:(k + 1) * _LANE]

    sse_ref[...] = part


def unsup_model_pallas(node_feature, w1, w2, *, tile_n=1024):
    """Runs the auto-encoder model; returns (pred [N, H] f32, sse scalar f32)."""
    N, F = node_feature.shape
    Fw, H = w1.shape
    assert F == Fw and w2.shape == (H, F)

    # Lane-dense padded dims.
    Fp = _round_up(F, _LANE)
    Hp = _round_up(H, _LANE)
    # Cap the node tile against the (sublane-rounded) node count so tiny graphs
    # are not padded up to the full default tile.  Sized for v7x's 64 MiB VMEM:
    # x + pred double-buffered at tile_n=1024, Fp=Hp=128 is ~2 MiB.
    tile_n = max(_SUBLANE,
                 min(_round_up(tile_n, _SUBLANE), _round_up(N, _SUBLANE)))
    Np = _round_up(N, tile_n)
    num_tiles = Np // tile_n

    f32 = jnp.float32
    # Zero padding: padded rows/cols reconstruct to exactly 0 -> contribute 0
    # to the SSE and are sliced off `pred` below, so the result is exact.
    x_p = jnp.zeros((Np, Fp), f32).at[:N, :F].set(node_feature.astype(f32))
    w1_p = jnp.zeros((Fp, Hp), f32).at[:F, :H].set(w1.astype(f32))
    w2_p = jnp.zeros((Hp, Fp), f32).at[:H, :F].set(w2.astype(f32))

    cost = pl.CostEstimate(
        flops=4 * Np * Fp * Hp + 3 * Np * Fp,
        transcendentals=0,
        bytes_accessed=4 * (2 * Np * Fp + Np * Hp + 2 * Fp * Hp
                            + num_tiles * _SUBLANE * _LANE),
    )

    pred_p, sse_part = pl.pallas_call(
        _unsup_model_kernel,
        out_shape=(
            jax.ShapeDtypeStruct((Np, Hp), f32),
            jax.ShapeDtypeStruct((num_tiles * _SUBLANE, _LANE), f32),
        ),
        grid_spec=pltpu.PrefetchScalarGridSpec(
            num_scalar_prefetch=0,
            grid=(num_tiles,),
            in_specs=[
                pl.BlockSpec((tile_n, Fp), lambda i: (i, 0)),   # x tile
                pl.BlockSpec((Fp, Hp), lambda i: (0, 0)),       # W1 (resident)
                pl.BlockSpec((Hp, Fp), lambda i: (0, 0)),       # W2 (resident)
            ],
            out_specs=[
                pl.BlockSpec((tile_n, Hp), lambda i: (i, 0)),        # pred tile
                pl.BlockSpec((_SUBLANE, _LANE), lambda i: (i, 0)),   # partial SSE
            ],
        ),
        compiler_params=pltpu.CompilerParams(
            # Every tile is fully independent (per-tile partial SSE), so the
            # node axis can be megacore-sharded on v7x.
            dimension_semantics=("parallel",),
        ),
        cost_estimate=cost,
    )(x_p, w1_p, w2_p)

    sse = jnp.sum(sse_part)            # single cross-lane reduce, outside kernel
    pred = pred_p[:N, :H]
    return pred, sse


# --------------------- Unsupervised wrapper (forward) ----------------------

class UnsupervisedPallas:
    """JAX/Pallas port of torchdrug.tasks.Unsupervised with a concrete model."""

    def __init__(self, feature_dim, hidden_dim, key):
        k1, k2 = jax.random.split(key)
        # Deterministic parameter init (Glorot-ish scaling).
        self.w1 = (jax.random.normal(k1, (feature_dim, hidden_dim), jnp.float32)
                   / jnp.sqrt(jnp.float32(feature_dim)))
        self.w2 = (jax.random.normal(k2, (hidden_dim, feature_dim), jnp.float32)
                   / jnp.sqrt(jnp.float32(hidden_dim)))

    def predict(self, batch, all_loss=None, metric=None):
        node_feature = batch["graph"]["node_feature"].astype(jnp.float32)
        N, F = node_feature.shape
        pred, sse = unsup_model_pallas(node_feature, self.w1, self.w2)
        loss = sse / jnp.float32(N * F)                # mean squared error
        if all_loss is not None:
            all_loss = all_loss + loss
        if metric is not None:
            metric["reconstruction loss"] = loss
        return pred, all_loss

    def forward(self, batch):
        all_loss = jnp.asarray(0.0, dtype=jnp.float32)
        metric = {}
        pred, all_loss = self.predict(batch, all_loss, metric)
        return (all_loss, metric)


# --------------------------------- main ------------------------------------

if __name__ == "__main__":
    key = jax.random.PRNGKey(0)
    k_feat, k_params = jax.random.split(key)

    N_NODES, FEAT_DIM, HIDDEN_DIM = 64, 32, 32
    node_feature = jax.random.normal(k_feat, (N_NODES, FEAT_DIM), jnp.float32)
    # TODO(synk): torchdrug passes a full Graph object (edges, adjacency, etc.);
    # only node_feature participates in this model's hot path, so the batch is
    # a dict with node features standing in for the graph.
    batch = {"graph": {"node_feature": node_feature}}

    task = UnsupervisedPallas(FEAT_DIM, HIDDEN_DIM, k_params)
    all_loss, metric = task.forward(batch)

    all_loss = jax.block_until_ready(all_loss)
    metric = {k: jax.block_until_ready(v) for k, v in metric.items()}

    # Pure-JAX reference check of the kernel.
    pred, _ = task.predict(batch)
    pred = jax.block_until_ready(pred)
    h_ref = jnp.maximum(node_feature @ task.w1, 0.0)
    x_rec_ref = h_ref @ task.w2
    loss_ref = jnp.mean((x_rec_ref - node_feature) ** 2)
    assert pred.shape == (N_NODES, HIDDEN_DIM)
    assert jnp.allclose(pred, h_ref, rtol=1e-4, atol=1e-4)
    assert jnp.allclose(all_loss, loss_ref, rtol=1e-5, atol=1e-5)

    print("KERNEL_OK")
</pallas_src>

<mosaic_0001>
module attributes {stable_mosaic.version = 11 : i64} {
  func.func @_unsup_model_kernel(%arg0: i32, %arg1: memref<64x128xf32, #tpu.memory_space<vmem>>, %arg2: memref<128x128xf32, #tpu.memory_space<vmem>>, %arg3: memref<128x128xf32, #tpu.memory_space<vmem>>, %arg4: memref<64x128xf32, #tpu.memory_space<vmem>>, %arg5: memref<8x128xf32, #tpu.memory_space<vmem>>) attributes {dimension_semantics = [#tpu.dimension_semantics<parallel>], iteration_bounds = array<i64: 1>, scalar_prefetch = 0 : i64, scratch_operands = 0 : i64, tpu.core_type = #tpu.core_type<tc>, window_params = [{transform_indices = @transform_0, window_bounds = array<i64: 64, 128>}, {pipeline_mode = #tpu.pipeline_mode<synchronous>, transform_indices = @transform_1, window_bounds = array<i64: 128, 128>}, {pipeline_mode = #tpu.pipeline_mode<synchronous>, transform_indices = @transform_2, window_bounds = array<i64: 128, 128>}, {transform_indices = @transform_3, window_bounds = array<i64: 64, 128>}, {transform_indices = @transform_4, window_bounds = array<i64: 8, 128>}]} {
    %c0 = arith.constant 0 : index
    %c0_0 = arith.constant 0 : index
    %0 = vector.load %arg1[%c0, %c0_0] : memref<64x128xf32, #tpu.memory_space<vmem>>, vector<64x128xf32>
    %c0_1 = arith.constant 0 : index
    %c0_2 = arith.constant 0 : index
    %1 = vector.load %arg2[%c0_1, %c0_2] : memref<128x128xf32, #tpu.memory_space<vmem>>, vector<128x128xf32>
    %cst = arith.constant dense<0.000000e+00> : vector<64x128xf32>
    %2 = tpu.matmul %0, %1, %cst {dimension_numbers = #tpu.dot_dimension_numbers<[1], [0], [0], [1], [0, 0, 1, 1], [], []>} : vector<64x128xf32>, vector<128x128xf32>, vector<64x128xf32> -> vector<64x128xf32>
    %cst_3 = arith.constant 0.000000e+00 : f32
    %3 = vector.broadcast %cst_3 : f32 to vector<64x128xf32>
    %4 = arith.maximumf %2, %3 : vector<64x128xf32>
    %c0_4 = arith.constant 0 : index
    %c0_5 = arith.constant 0 : index
    %5 = vector.load %arg3[%c0_4, %c0_5] : memref<128x128xf32, #tpu.memory_space<vmem>>, vector<128x128xf32>
    %cst_6 = arith.constant dense<0.000000e+00> : vector<64x128xf32>
    %6 = tpu.matmul %4, %5, %cst_6 {dimension_numbers = #tpu.dot_dimension_numbers<[1], [0], [0], [1], [0, 0, 1, 1], [], []>} : vector<64x128xf32>, vector<128x128xf32>, vector<64x128xf32> -> vector<64x128xf32>
    %c0_7 = arith.constant 0 : index
    %c0_8 = arith.constant 0 : index
    %7 = vector.load %arg4[%c0_7, %c0_8] : memref<64x128xf32, #tpu.memory_space<vmem>>, vector<64x128xf32>
    tpu.vector_store %arg4[%c0_7, %c0_8], %4 {strides = array<i32>} : memref<64x128xf32, #tpu.memory_space<vmem>>, vector<64x128xf32>,
    %8 = arith.subf %6, %0 : vector<64x128xf32>
    %9 = arith.mulf %8, %8 : vector<64x128xf32>
    %10 = vector.extract_strided_slice %9 {offsets = [0, 0], sizes = [8, 128], strides = [1, 1]} : vector<64x128xf32> to vector<8x128xf32>
    %11 = vector.extract_strided_slice %9 {offsets = [8, 0], sizes = [8, 128], strides = [1, 1]} : vector<64x128xf32> to vector<8x128xf32>
    %12 = arith.addf %10, %11 : vector<8x128xf32>
    %13 = vector.extract_strided_slice %9 {offsets = [16, 0], sizes = [8, 128], strides = [1, 1]} : vector<64x128xf32> to vector<8x128xf32>
    %14 = arith.addf %12, %13 : vector<8x128xf32>
    %15 = vector.extract_strided_slice %9 {offsets = [24, 0], sizes = [8, 128], strides = [1, 1]} : vector<64x128xf32> to vector<8x128xf32>
    %16 = arith.addf %14, %15 : vector<8x128xf32>
    %17 = vector.extract_strided_slice %9 {offsets = [32, 0], sizes = [8, 128], strides = [1, 1]} : vector<64x128xf32> to vector<8x128xf32>
    %18 = arith.addf %16, %17 : vector<8x128xf32>
    %19 = vector.extract_strided_slice %9 {offsets = [40, 0], sizes = [8, 128], strides = [1, 1]} : vector<64x128xf32> to vector<8x128xf32>
    %20 = arith.addf %18, %19 : vector<8x128xf32>
    %21 = vector.extract_strided_slice %9 {offsets = [48, 0], sizes = [8, 128], strides = [1, 1]} : vector<64x128xf32> to vector<8x128xf32>
    %22 = arith.addf %20, %21 : vector<8x128xf32>
    %23 = vector.extract_strided_slice %9 {offsets = [56, 0], sizes = [8, 128], strides = [1, 1]} : vector<64x128xf32> to vector<8x128xf32>
    %24 = arith.addf %22, %23 : vector<8x128xf32>
    %c0_9 = arith.constant 0 : index
    %c0_10 = arith.constant 0 : index
    %25 = vector.load %arg5[%c0_9, %c0_10] : memref<8x128xf32, #tpu.memory_space<vmem>>, vector<8x128xf32>
    tpu.vector_store %arg5[%c0_9, %c0_10], %24 {strides = array<i32>} : memref<8x128xf32, #tpu.memory_space<vmem>>, vector<8x128xf32>,
    return
  }
  func.func @transform_0(%arg0: i32) -> (i32, i32) {
    %c0_i32 = arith.constant 0 : i32
    %c0_i32_0 = arith.constant 0 : i32
    return %arg0, %c0_i32 : i32, i32
  }
  func.func @transform_1(%arg0: i32) -> (i32, i32) {
    %c0_i32 = arith.constant 0 : i32
    %c0_i32_0 = arith.constant 0 : i32
    %c0_i32_1 = arith.constant 0 : i32
    return %c0_i32, %c0_i32_0 : i32, i32
  }
  func.func @transform_2(%arg0: i32) -> (i32, i32) {
    %c0_i32 = arith.constant 0 : i32
    %c0_i32_0 = arith.constant 0 : i32
    %c0_i32_1 = arith.constant 0 : i32
    return %c0_i32, %c0_i32_0 : i32, i32
  }
  func.func @transform_3(%arg0: i32) -> (i32, i32) {
    %c0_i32 = arith.constant 0 : i32
    %c0_i32_0 = arith.constant 0 : i32
    return %arg0, %c0_i32 : i32, i32
  }
  func.func @transform_4(%arg0: i32) -> (i32, i32) {
    %c0_i32 = arith.constant 0 : i32
    %c0_i32_0 = arith.constant 0 : i32
    return %arg0, %c0_i32 : i32, i32
  }
}

</mosaic_0001>

<bundles_post_ra>
// kernel: tpu_custom_call.1
= control target key start
LH: loop header
LB: loop body
LE: loop exit
PB: predicated region body
PF: predicated region fallthrough
CT: control target
= control target key end

     0   :  { %10 = vsyncpa [#allocation3], 0  ;;  %s521_s0 = inlined_call_operand.hbm [shape: f32[64,128], index: 0, kind: input, shape index: {}]   ;;  %s522_s1 = inlined_call_operand.hbm [shape: f32[128,128], index: 1, kind: input, shape index: {}]   ;;  %s523_s2 = inlined_call_operand.hbm [shape: f32[128,128], index: 2, kind: input, shape index: {}]   ;;  %s524_s3 = inlined_call_operand.hbm [shape: f32[64,128], index: 3, kind: output, shape index: {0}]   ;;  %s525_s4 = inlined_call_operand.hbm [shape: f32[8,128], index: 4, kind: output, shape index: {1}]  }
   0x1   :  { %11 = vsyncpa [#allocation6], 0 }
   0x2   :  { %12 = vsyncpa [#allocation4], 0 }
   0x3   :  { %13 = vsyncpa [#allocation10], 0  ;;  %s31_s17 = sshll.u32 %s522_s1, 4  ;;  %s430_s18 = smov [#allocation5]   ;;  %s32_s17 = int_to_ptr.hbm [resolvable:$true] %s31_s17 }
   0x4   :  { %s33_s19 = sshll.u32 %s430_s18, 4  ;;  %s18_s22 = sshll.u32 %s521_s0, 4  ;;  %s34_s19 = int_to_ptr.vmem [resolvable:$true] %s33_s19  ;;  %s19_s22 = int_to_ptr.hbm [resolvable:$true] %s18_s22 }
   0x5   :  { %s431_s23 = smov 128   ;;  %s432_s24 = smov 8  }
   0x6   :  { %39 = dma.hbm_to_vmem [thread:$0]  %s32_s17, 2048, %s34_s19, [#allocation6], %s431_s23, %s431_s23, %s432_s24  }
   0x7   :  { %s433_s25 = smov [#allocation2]   ;;  %s44_s1 = sshll.u32 %s523_s2, 4  ;;  %s45_s1 = int_to_ptr.hbm [resolvable:$true] %s44_s1 }
   0x8   :  { %s20_s26 = sshll.u32 %s433_s25, 4  ;;  %s434_s0 = smov [#allocation7]   ;;  %s21_s26 = int_to_ptr.vmem [resolvable:$true] %s20_s26 }
   0x9   :  { %26 = dma.hbm_to_vmem [thread:$0]  %s19_s22, 1024, %s21_s26, [#allocation3], %s431_s23, %s431_s23, %s432_s24  }
   0xa   :  { %s46_s29 = sshll.u32 %s434_s0, 4  ;;  %s47_s29 = int_to_ptr.vmem [resolvable:$true] %s46_s29 }
   0xb   :  { %52 = dma.hbm_to_vmem [thread:$0]  %s45_s1, 2048, %s47_s29, [#allocation6], %s431_s23, %s431_s23, %s432_s24  }
   0xc   :  { %422 = dma.done.wait [#allocation3], 1024  }
   0xd   :  { %423 = vsyncadd [#allocation3], 4294966272 }
   0xe   :  { %424 = dma.done.wait [#allocation6], 4096  }
   0xf   :  { %425 = vsyncadd [#allocation6], 4294963200  ;;  %v88_v0 = vld [vmem:[#allocation5 + $0x78] sm:$0xff]  ;;  %v87_v1 = vld [vmem:[#allocation5 + $0x70] sm:$0xff]  ;;  %s435_s2 = smov [#allocation8]   ;;  %s233_s7 = sshll.u32 %s524_s3, 4  ;;  %s234_s7 = int_to_ptr.hbm [resolvable:$true] %s233_s7 }
  0x10   :  { %89 = vmatpush.msra.mxu0 %v88_v0  ;;  %263 = vmatpush.msra.mxu2 %v88_v0  ;;  %v86_v2 = vld [vmem:[#allocation5 + $0x68] sm:$0xff]  ;;  %v85_v3 = vld [vmem:[#allocation5 + $0x60] sm:$0xff]  ;;  %v84_v4 = vld [vmem:[#allocation5 + $0x58] sm:$0xff]  ;;  %s231_s30 = sshll.u32 %s435_s2, 4  ;;  %s436_s3 = smov [#allocation9]   ;;  %s232_s30 = int_to_ptr.vmem [resolvable:$true] %s231_s30 }
  0x11   :  { %v83_v5 = vld [vmem:[#allocation5 + $0x50] sm:$0xff]  ;;  %v82_v6 = vld [vmem:[#allocation5 + $0x48] sm:$0xff]  ;;  %v81_v7 = vld [vmem:[#allocation5 + $0x40] sm:$0xff]  ;;  %s245_s8 = sshll.u32 %s436_s3, 4  ;;  %s247_s11 = sshll.u32 %s525_s4, 4  ;;  %s246_s8 = int_to_ptr.vmem [resolvable:$true] %s245_s8  ;;  %s248_s11 = int_to_ptr.hbm [resolvable:$true] %s247_s11 }
  0x12   :  { %90 = vmatpush.msra.mxu0 %v87_v1  ;;  %264 = vmatpush.msra.mxu2 %v87_v1  ;;  %v80_v8 = vld [vmem:[#allocation5 + $0x38] sm:$0xff]  ;;  %v79_v9 = vld [vmem:[#allocation5 + $0x30] sm:$0xff]  ;;  %v78_v10 = vld [vmem:[#allocation5 + $0x28] sm:$0xff] }
  0x13   :  { %v77_v11 = vld [vmem:[#allocation5 + $0x20] sm:$0xff]  ;;  %v76_v12 = vld [vmem:[#allocation5 + $0x18] sm:$0xff]  ;;  %v75_v13 = vld [vmem:[#allocation5 + $0x10] sm:$0xff] }
  0x14   :  { %91 = vmatpush.msra.mxu0 %v86_v2  ;;  %265 = vmatpush.msra.mxu2 %v86_v2  ;;  %v153_v14 = vld [vmem:[#allocation7 + $0x78] sm:$0xff]  ;;  %v152_v15 = vld [vmem:[#allocation7 + $0x70] sm:$0xff]  ;;  %v74_v16 = vld [vmem:[#allocation5 + $0x8] sm:$0xff] }
  0x15   :  { %154 = vmatpush.msra.mxu1 %v153_v14  ;;  %279 = vmatpush.msra.mxu3 %v153_v14  ;;  %v151_v17 = vld [vmem:[#allocation7 + $0x68] sm:$0xff]  ;;  %v73_v18 = vld [vmem:[#allocation5] sm:$0xff]  ;;  %v149_v22 = vld [vmem:[#allocation7 + $0x58] sm:$0xff] }
  0x16   :  { %92 = vmatpush.msra.mxu0 %v85_v3  ;;  %266 = vmatpush.msra.mxu2 %v85_v3  ;;  %v480_v19 = vld [vmem:[#allocation2] sm:$0xff]  ;;  %v148_v23 = vld [vmem:[#allocation7 + $0x50] sm:$0xff]  ;;  %v147_v24 = vld [vmem:[#allocation7 + $0x48] sm:$0xff] }
  0x17   :  { %155 = vmatpush.msra.mxu1 %v152_v15  ;;  %280 = vmatpush.msra.mxu3 %v152_v15  ;;  %v482_v20 = vld [vmem:[#allocation2 + $0x20] sm:$0xff]  ;;  %v486_v25 = vld [vmem:[#allocation2 + $0x8] sm:$0xff]  ;;  %v145_v28 = vld [vmem:[#allocation7 + $0x38] sm:$0xff] }
  0x18   :  { %93 = vmatpush.msra.mxu0 %v84_v4  ;;  %267 = vmatpush.msra.mxu2 %v84_v4  ;;  %v150_v21 = vld [vmem:[#allocation7 + $0x60] sm:$0xff]  ;;  %v488_v26 = vld [vmem:[#allocation2 + $0x28] sm:$0xff]  ;;  %v144_v29 = vld [vmem:[#allocation7 + $0x30] sm:$0xff] }
  0x19   :  { %156 = vmatpush.msra.mxu1 %v151_v17  ;;  %281 = vmatpush.msra.mxu3 %v151_v17  ;;  %v146_v27 = vld [vmem:[#allocation7 + $0x40] sm:$0xff]  ;;  %v143_v30 = vld [vmem:[#allocation7 + $0x28] sm:$0xff]  ;;  %v492_v31 = vld [vmem:[#allocation2 + $0x10] sm:$0xff] }
  0x1a   :  { %94 = vmatpush.msra.mxu0 %v83_v5  ;;  %268 = vmatpush.msra.mxu2 %v83_v5  ;;  %v494_v32 = vld [vmem:[#allocation2 + $0x30] sm:$0xff]  ;;  %v142_v33 = vld [vmem:[#allocation7 + $0x20] sm:$0xff]  ;;  %v141_v34 = vld [vmem:[#allocation7 + $0x18] sm:$0xff] }
  0x1b   :  { %157 = vmatpush.msra.mxu1 %v150_v21  ;;  %282 = vmatpush.msra.mxu3 %v150_v21  ;;  %v140_v35 = vld [vmem:[#allocation7 + $0x10] sm:$0xff]  ;;  %v498_v36 = vld [vmem:[#allocation2 + $0x18] sm:$0xff]  ;;  %v139_v38 = vld [vmem:[#allocation7 + $0x8] sm:$0xff] }
  0x1c   :  { %95 = vmatpush.msra.mxu0 %v82_v6  ;;  %269 = vmatpush.msra.mxu2 %v82_v6  ;;  %v500_v37 = vld [vmem:[#allocation2 + $0x38] sm:$0xff]  ;;  %v138_v39 = vld [vmem:[#allocation7] sm:$0xff] }
  0x1d   :  { %158 = vmatpush.msra.mxu1 %v149_v22  ;;  %283 = vmatpush.msra.mxu3 %v149_v22 }
  0x1e   :  { %96 = vmatpush.msra.mxu0 %v81_v7  ;;  %270 = vmatpush.msra.mxu2 %v81_v7 }
  0x1f   :  { %159 = vmatpush.msra.mxu1 %v148_v23  ;;  %284 = vmatpush.msra.mxu3 %v148_v23 }
  0x20   :  { %97 = vmatpush.msra.mxu0 %v80_v8  ;;  %271 = vmatpush.msra.mxu2 %v80_v8 }
  0x21   :  { %160 = vmatpush.msra.mxu1 %v147_v24  ;;  %285 = vmatpush.msra.mxu3 %v147_v24 }
  0x22   :  { %98 = vmatpush.msra.mxu0 %v79_v9  ;;  %272 = vmatpush.msra.mxu2 %v79_v9 }
  0x23   :  { %161 = vmatpush.msra.mxu1 %v146_v27  ;;  %286 = vmatpush.msra.mxu3 %v146_v27 }
  0x24   :  { %99 = vmatpush.msra.mxu0 %v78_v10  ;;  %273 = vmatpush.msra.mxu2 %v78_v10 }
  0x25   :  { %162 = vmatpush.msra.mxu1 %v145_v28  ;;  %287 = vmatpush.msra.mxu3 %v145_v28 }
  0x26   :  { %100 = vmatpush.msra.mxu0 %v77_v11  ;;  %274 = vmatpush.msra.mxu2 %v77_v11 }
  0x27   :  { %163 = vmatpush.msra.mxu1 %v144_v29  ;;  %288 = vmatpush.msra.mxu3 %v144_v29 }
  0x28   :  { %101 = vmatpush.msra.mxu0 %v76_v12  ;;  %275 = vmatpush.msra.mxu2 %v76_v12 }
  0x29   :  { %164 = vmatpush.msra.mxu1 %v143_v30  ;;  %289 = vmatpush.msra.mxu3 %v143_v30 }
  0x2a   :  { %102 = vmatpush.msra.mxu0 %v75_v13  ;;  %276 = vmatpush.msra.mxu2 %v75_v13 }
  0x2b   :  { %165 = vmatpush.msra.mxu1 %v142_v33  ;;  %290 = vmatpush.msra.mxu3 %v142_v33 }
  0x2c   :  { %103 = vmatpush.msra.mxu0 %v74_v16  ;;  %277 = vmatpush.msra.mxu2 %v74_v16 }
  0x2d   :  { %166 = vmatpush.msra.mxu1 %v141_v34  ;;  %291 = vmatpush.msra.mxu3 %v141_v34 }
  0x2e   :  { %104 = vmatpush.msra.mxu0 %v73_v18  ;;  %278 = vmatpush.msra.mxu2 %v73_v18 }
  0x2f   :  { %105 = vmatmul.f32.vlgmr.msra.gmra.mxu0 %v480_v19  ;;  %117 = vmatmul.f32.vlgmr.msra.gmra.mxu2 %v482_v20 }
  0x30   :  { %167 = vmatpush.msra.mxu1 %v140_v35  ;;  %292 = vmatpush.msra.mxu3 %v140_v35 }
  0x32   :  { %168 = vmatpush.msra.mxu1 %v139_v38  ;;  %293 = vmatpush.msra.mxu3 %v139_v38 }
  0x34   :  { %169 = vmatpush.msra.mxu1 %v138_v39  ;;  %294 = vmatpush.msra.mxu3 %v138_v39 }
  0x37   :  { %108 = vmatmul.f32.gmra.mxu0 %v486_v25  ;;  %120 = vmatmul.f32.gmra.mxu2 %v488_v26 }
  0x3f   :  { %111 = vmatmul.f32.gmra.mxu0 %v492_v31  ;;  %123 = vmatmul.f32.gmra.mxu2 %v494_v32 }
  0x47   :  { %114 = vmatmul.f32.gmra.mxu0 %v498_v36  ;;  %126 = vmatmul.f32.gmra.mxu2 %v500_v37 }
  0xac   :  { %v106_v40 = vpop.f32.mrf.mxu0 }
  0xad   :  { %v130_v41 = vmax.f32 %v106_v40, 0.0 }
  0xaf   :  { %195 = vst [vmem:[#allocation8] sm:$0xff] %v130_v41  ;;  %170 = vmatmul.f32.vlgmr.msra.gmra.mxu1 %v130_v41 }
  0xb2   :  { %v118_v42 = vpop.f32.mrf.mxu2 }
  0xb3   :  { %v134_v43 = vmax.f32 %v118_v42, 0.0 }
  0xb4   :  { %v109_v44 = vpop.f32.mrf.mxu0 }
  0xb5   :  { %199 = vst [vmem:[#allocation8 + $0x20] sm:$0xff] %v134_v43  ;;  %v131_v45 = vmax.f32 %v109_v44, 0.0  ;;  %182 = vmatmul.f32.vlgmr.msra.gmra.mxu3 %v134_v43 }
  0xb7   :  { %196 = vst [vmem:[#allocation8 + $0x8] sm:$0xff] %v131_v45  ;;  %173 = vmatmul.f32.gmra.mxu1 %v131_v45 }
  0xba   :  { %v121_v46 = vpop.f32.mrf.mxu2 }
  0xbb   :  { %v135_v47 = vmax.f32 %v121_v46, 0.0 }
  0xbc   :  { %v112_v48 = vpop.f32.mrf.mxu0 }
  0xbd   :  { %200 = vst [vmem:[#allocation8 + $0x28] sm:$0xff] %v135_v47  ;;  %v132_v49 = vmax.f32 %v112_v48, 0.0  ;;  %185 = vmatmul.f32.gmra.mxu3 %v135_v47 }
  0xbf   :  { %197 = vst [vmem:[#allocation8 + $0x10] sm:$0xff] %v132_v49  ;;  %176 = vmatmul.f32.gmra.mxu1 %v132_v49 }
  0xc2   :  { %v124_v50 = vpop.f32.mrf.mxu2 }
  0xc3   :  { %v136_v51 = vmax.f32 %v124_v50, 0.0 }
  0xc4   :  { %v115_v52 = vpop.f32.mrf.mxu0 }
  0xc5   :  { %201 = vst [vmem:[#allocation8 + $0x30] sm:$0xff] %v136_v51  ;;  %v133_v53 = vmax.f32 %v115_v52, 0.0  ;;  %188 = vmatmul.f32.gmra.mxu3 %v136_v51 }
  0xc7   :  { %198 = vst [vmem:[#allocation8 + $0x18] sm:$0xff] %v133_v53  ;;  %179 = vmatmul.f32.gmra.mxu1 %v133_v53 }
  0xca   :  { %v127_v54 = vpop.f32.mrf.mxu2 }
  0xcb   :  { %v137_v55 = vmax.f32 %v127_v54, 0.0 }
  0xcd   :  { %202 = vst [vmem:[#allocation8 + $0x38] sm:$0xff] %v137_v55  ;;  %191 = vmatmul.f32.gmra.mxu3 %v137_v55 }
  0xce   :  { %239 = dma.vmem_to_hbm [thread:$0]  %s232_s30, 1024, %s234_s7, [#allocation4], %s431_s23, %s431_s23, %s432_s24  }
 0x12c   :  { %v171_v56 = vpop.f32.mrf.mxu1 }
 0x12d   :  { %v203_v61 = vsub.f32 %v171_v56, %v480_v19 }
 0x12f   :  { %v211_v1 = vmul.f32 %v203_v61, %v203_v61 }
 0x134   :  { %v174_v57 = vpop.f32.mrf.mxu1 }
 0x135   :  { %v204_v60 = vsub.f32 %v174_v57, %v486_v25 }
 0x137   :  { %v212_v0 = vmul.f32 %v204_v60, %v204_v60 }
 0x138   :  { %v183_v58 = vpop.f32.mrf.mxu3 }
 0x139   :  { %v219_v4 = vadd.f32 %v212_v0, %v211_v1  ;;  %v207_v5 = vsub.f32 %v183_v58, %v482_v20 }
 0x13b   :  { %v215_v10 = vmul.f32 %v207_v5, %v207_v5 }
 0x13c   :  { %v177_v59 = vpop.f32.mrf.mxu1 }
 0x13d   :  { %v205_v62 = vsub.f32 %v177_v59, %v492_v31 }
 0x13f   :  { %v213_v2 = vmul.f32 %v205_v62, %v205_v62 }
 0x140   :  { %v186_v63 = vpop.f32.mrf.mxu3 }
 0x141   :  { %v220_v7 = vadd.f32 %v219_v4, %v213_v2  ;;  %v208_v11 = vsub.f32 %v186_v63, %v488_v26 }
 0x143   :  { %v216_v14 = vmul.f32 %v208_v11, %v208_v11 }
 0x144   :  { %v180_v3 = vpop.f32.mrf.mxu1 }
 0x145   :  { %v206_v6 = vsub.f32 %v180_v3, %v498_v36 }
 0x147   :  { %v214_v8 = vmul.f32 %v206_v6, %v206_v6 }
 0x148   :  { %v189_v9 = vpop.f32.mrf.mxu3 }
 0x149   :  { %v221_v12 = vadd.f32 %v220_v7, %v214_v8  ;;  %v209_v15 = vsub.f32 %v189_v9, %v494_v32 }
 0x14b   :  { %v222_v13 = vadd.f32 %v221_v12, %v215_v10  ;;  %v217_v18 = vmul.f32 %v209_v15, %v209_v15 }
 0x14d   :  { %v223_v16 = vadd.f32 %v222_v13, %v216_v14 }
 0x14f   :  { %v224_v20 = vadd.f32 %v223_v16, %v217_v18 }
 0x150   :  { %v192_v17 = vpop.f32.mrf.mxu3 }
 0x151   :  { %v210_v19 = vsub.f32 %v192_v17, %v500_v37 }
 0x153   :  { %v218_v21 = vmul.f32 %v210_v19, %v210_v19 }
 0x155   :  { %v225_v22 = vadd.f32 %v224_v20, %v218_v21 }
 0x157   :  { %226 = vst [vmem:[#allocation9] sm:$0xff] %v225_v22 }
 0x158   :  { %250 = dma.vmem_to_hbm [thread:$0]  %s246_s8, 128, %s248_s11, [#allocation10]  }
 0x159   :  { %426 = dma.done.wait [#allocation4], 1024  }
 0x15a   :  { %427 = vsyncadd [#allocation4], 4294966272 }
 0x15b   :  { %428 = dma.done.wait [#allocation10], 128  }
 0x15c   :  { %429 = vsyncadd [#allocation10], 4294967168 }
 0x15d   :  { %259 = vsyncpa [#allocation3], 1 }
 0x15e   :  { %260 = vsyncpa [#allocation6], 1 }
 0x15f   :  { %261 = vsyncpa [#allocation4], 1 }
 0x160   :  { %262 = vsyncpa [#allocation10], 1 }

</bundles_post_ra>
